<compile_context>
chip_gen: v7x
topology: tpu7x:2x2x1
jax: 0.10.0
libtpu: 0.0.40
codegen_flags: <defaults>
</compile_context>

<pallas_src>
import functools

import jax
import jax.numpy as jnp
from jax.experimental import pallas as pl
from jax.experimental.pallas import tpu as pltpu

_MIB = 1024 * 1024


def _round_up(x, m):
    return ((x + m - 1) // m) * m


def _chip_budgets():
    """(tile VMEM budget, vmem_limit_bytes, min #T tiles) — generation aware."""
    try:
        vmem_phys = pltpu.get_tpu_info().vmem_capacity_bytes
    except Exception:
        vmem_phys = 64 * _MIB          # unknown: assume the tightest (v7x-like)
    if vmem_phys <= 64 * _MIB:
        # v7x-class: 64 MiB physical VMEM per TC — tight budget, >=2 steps/TC.
        return 24 * _MIB, 40 * _MIB, 4
    # v5e / v6e: 128 MiB physical VMEM — longer DMA bursts pay off.
    return 80 * _MIB, 96 * _MIB, 2


def _choose_tiles(N, K, D, T, budget_bytes, min_t_tiles):
    """Pick (n_tile, Npad, tt, Tpad, Dpad) for lane-dense, VMEM-safe blocks."""
    Tpad = _round_up(T, 128)
    Dpad = _round_up(D, 8)

    def step_bytes(n_tile, tt):
        # Double-buffered I/O blocks: lambda, phi_prob (in), theta, pi (out).
        io = 2 * (n_tile * K + K * Dpad + n_tile * K + n_tile * Dpad)
        # In-kernel temporaries: exp/theta, phi_prob in vregs, pi acc + mask.
        tmp = n_tile * K + K * Dpad + 2 * n_tile * Dpad
        return int(1.5 * 4 * (io + tmp) * tt)

    # N tile: multiple of 8, as large as fits at the minimum T tile.
    n_tile = _round_up(N, 8)
    while n_tile > 8 and step_bytes(n_tile, 128) > budget_bytes:
        n_tile -= 8
    Npad = _round_up(N, n_tile)

    # T tile: multiple of 128 dividing Tpad, grown while it fits the budget and
    # keeps at least `min_t_tiles` grid steps along T.
    tt = 128
    while (Tpad % (tt * 2) == 0
           and Tpad // (tt * 2) >= min_t_tiles
           and step_bytes(n_tile, tt * 2) <= budget_bytes):
        tt *= 2
    return n_tile, Npad, tt, Tpad, Dpad


def _sigmoid_kernel(phi_ref, phip_ref):
    # phi_ref / phip_ref: (K, Dpad, tt) f32.  Memory-bound; computed once.
    phip_ref[...] = 1.0 / (1.0 + jnp.exp(-phi_ref[...]))


def _theta_pi_kernel(lam_ref, phip_ref, et_ref, pi_ref, theta_ref, *, eps, tt):
    # lam_ref:   (n_tile, K, tt)  f32
    # phip_ref:  (K, Dpad, tt)    f32
    # et_ref:    (n_tile, Dpad, 1) int32
    # pi_ref:    (n_tile, Dpad, tt) f32
    # theta_ref: (n_tile, K, tt)  f32

    # Softmax over K (axis=1), max-subtracted; single reciprocal-multiply
    # instead of K full-width divides.
    lam = lam_ref[...]
    m = jnp.max(lam, axis=1, keepdims=True)
    e = jnp.exp(lam - m)
    inv = 1.0 / jnp.sum(e, axis=1, keepdims=True)        # (n_tile, 1, tt)
    theta = e * inv
    theta_ref[...] = theta

    # einsum 'nkt,kdt->ndt' with T on the lane axis: K is tiny, so unrolled
    # VPU broadcast FMAs (no MXU).
    phip = phip_ref[...]
    K = theta.shape[1]
    pi = theta[:, 0, :][:, None, :] * phip[0][None, :, :]    # (n_tile, Dpad, tt)
    for k in range(1, K):
        pi = pi + theta[:, k, :][:, None, :] * phip[k][None, :, :]

    # Non-recurrence mask: keep timesteps t <= event_time[n, d].
    # iota is only (1,1,tt); event_times has D on sublanes so the compare is a
    # free lane broadcast.  jnp.where avoids a full f32 mask + multiply.
    t0 = pl.program_id(1) * tt
    t_idx = t0 + jax.lax.broadcasted_iota(jnp.int32, (1, 1, tt), 2)
    keep = t_idx <= et_ref[...]
    pi_ref[...] = jnp.clip(jnp.where(keep, pi, 0.0), eps, 1.0 - eps)


def aladynoulli_forward(lambda_, phi, event_times, eps=1e-8):
    """Pallas forward pass.

    Args:
      lambda_:     (N, K, T) float32
      phi:         (K, D, T) float32
      event_times: (N, D)    int32
    Returns:
      pi (N, D, T), theta (N, K, T), phi_prob (K, D, T) — matching PyTorch.
    """
    N, K, T = lambda_.shape
    K2, D, T2 = phi.shape
    assert K2 == K and T2 == T

    budget, vmem_limit, min_t_tiles = _chip_budgets()
    n_tile, Npad, tt, Tpad, Dpad = _choose_tiles(N, K, D, T, budget, min_t_tiles)
    num_n = Npad // n_tile
    num_t = Tpad // tt

    lam = lambda_.astype(jnp.float32)
    phi_f = phi.astype(jnp.float32)
    et = event_times.astype(jnp.int32)
    if (Npad, Tpad) != (N, T):
        lam = jnp.pad(lam, ((0, Npad - N), (0, 0), (0, Tpad - T)))
    if (Dpad, Tpad) != (D, T):
        phi_f = jnp.pad(phi_f, ((0, 0), (0, Dpad - D), (0, Tpad - T)))
    if (Npad, Dpad) != (N, D):
        et = jnp.pad(et, ((0, Npad - N), (0, Dpad - D)))
    et = et[:, :, None]                       # (Npad, Dpad, 1): D on sublanes

    # Kernel 1: phi_prob = sigmoid(phi), computed exactly once (not per N tile).
    phi_prob_full = pl.pallas_call(
        _sigmoid_kernel,
        out_shape=jax.ShapeDtypeStruct((K, Dpad, Tpad), jnp.float32),
        grid=(num_t,),
        in_specs=[pl.BlockSpec((K, Dpad, tt), lambda t: (0, 0, t))],
        out_specs=pl.BlockSpec((K, Dpad, tt), lambda t: (0, 0, t)),
        compiler_params=pltpu.CompilerParams(
            dimension_semantics=("parallel",),
            vmem_limit_bytes=vmem_limit,
        ),
    )(phi_f)

    # Kernel 2: theta = softmax(lambda), pi = theta @ phi_prob, masked + clipped.
    kernel = functools.partial(_theta_pi_kernel, eps=eps, tt=tt)
    pi_full, theta_full = pl.pallas_call(
        kernel,
        out_shape=(
            jax.ShapeDtypeStruct((Npad, Dpad, Tpad), jnp.float32),
            jax.ShapeDtypeStruct((Npad, K, Tpad), jnp.float32),
        ),
        grid=(num_n, num_t),
        in_specs=[
            pl.BlockSpec((n_tile, K, tt), lambda n, t: (n, 0, t)),
            pl.BlockSpec((K, Dpad, tt), lambda n, t: (0, 0, t)),
            pl.BlockSpec((n_tile, Dpad, 1), lambda n, t: (n, 0, 0)),
        ],
        out_specs=(
            pl.BlockSpec((n_tile, Dpad, tt), lambda n, t: (n, 0, t)),
            pl.BlockSpec((n_tile, K, tt), lambda n, t: (n, 0, t)),
        ),
        compiler_params=pltpu.CompilerParams(
            dimension_semantics=("parallel", "parallel"),
            vmem_limit_bytes=vmem_limit,
        ),
    )(lam, phi_prob_full, et)

    # Slice off alignment padding.
    pi = pi_full[:N, :D, :T]
    theta = theta_full[:N, :, :T]
    phi_prob = phi_prob_full[:, :D, :T]
    return pi, theta, phi_prob


def _reference_forward(lambda_, phi, event_times, eps=1e-8):
    """Pure-JAX reference mirroring the PyTorch forward."""
    theta = jax.nn.softmax(lambda_, axis=1)                  # (N, K, T)
    phi_prob = jax.nn.sigmoid(phi)                           # (K, D, T)
    pi = jnp.einsum('nkt,kdt->ndt', theta, phi_prob)         # (N, D, T)
    T = lambda_.shape[2]
    tgrid = jnp.arange(T)[None, None, :]
    mask = (tgrid <= event_times[:, :, None]).astype(pi.dtype)
    pi = jnp.clip(pi * mask, eps, 1.0 - eps)
    return pi, theta, phi_prob


def _run_case(key, N, D, T, K):
    k_lam, k_phi, k_et = jax.random.split(key, 3)
    lambda_ = 0.1 * jax.random.normal(k_lam, (N, K, T), dtype=jnp.float32)
    phi = 0.1 * jax.random.normal(k_phi, (K, D, T), dtype=jnp.float32)
    event_times = jax.random.randint(k_et, (N, D), 0, T + 1, dtype=jnp.int32)

    pi, theta, phi_prob = aladynoulli_forward(lambda_, phi, event_times)
    jax.block_until_ready((pi, theta, phi_prob))

    pi_r, theta_r, phip_r = _reference_forward(lambda_, phi, event_times)
    assert jnp.allclose(pi, pi_r, atol=1e-5), "pi mismatch"
    assert jnp.allclose(theta, theta_r, atol=1e-5), "theta mismatch"
    assert jnp.allclose(phi_prob, phip_r, atol=1e-5), "phi_prob mismatch"


if __name__ == "__main__":
    key = jax.random.PRNGKey(0)
    k0, k1 = jax.random.split(key)
    # Aligned small shapes (N individuals, D diseases, T timesteps, K topics).
    _run_case(k0, N=8, D=16, T=256, K=4)
    # Ragged shapes exercising the D/T/N padding path.
    _run_case(k1, N=5, D=13, T=100, K=3)
    print("KERNEL_OK")
</pallas_src>

<mosaic_0001>
module attributes {stable_mosaic.version = 11 : i64} {
  func.func @_sigmoid_kernel(%arg0: i32, %arg1: memref<4x16x128xf32, #tpu.memory_space<vmem>>, %arg2: memref<4x16x128xf32, #tpu.memory_space<vmem>>) attributes {dimension_semantics = [#tpu.dimension_semantics<parallel>], iteration_bounds = array<i64: 2>, scalar_prefetch = 0 : i64, scratch_operands = 0 : i64, tpu.core_type = #tpu.core_type<tc>, window_params = [{transform_indices = @transform_0, window_bounds = array<i64: 4, 16, 128>}, {transform_indices = @transform_1, window_bounds = array<i64: 4, 16, 128>}]} {
    %c0 = arith.constant 0 : index
    %c0_0 = arith.constant 0 : index
    %c0_1 = arith.constant 0 : index
    %0 = vector.load %arg1[%c0, %c0_0, %c0_1] : memref<4x16x128xf32, #tpu.memory_space<vmem>>, vector<4x16x128xf32>
    %cst = arith.constant 0.000000e+00 : f32
    %1 = vector.broadcast %cst : f32 to vector<4x16x128xf32>
    %2 = arith.subf %1, %0 : vector<4x16x128xf32>
    %3 = math.exp %2 : vector<4x16x128xf32>
    %cst_2 = arith.constant 1.000000e+00 : f32
    %4 = vector.broadcast %cst_2 : f32 to vector<4x16x128xf32>
    %5 = arith.addf %4, %3 : vector<4x16x128xf32>
    %cst_3 = arith.constant 1.000000e+00 : f32
    %6 = vector.broadcast %cst_3 : f32 to vector<4x16x128xf32>
    %7 = arith.divf %6, %5 : vector<4x16x128xf32>
    %c0_4 = arith.constant 0 : index
    %c0_5 = arith.constant 0 : index
    %c0_6 = arith.constant 0 : index
    %8 = vector.load %arg2[%c0_4, %c0_5, %c0_6] : memref<4x16x128xf32, #tpu.memory_space<vmem>>, vector<4x16x128xf32>
    tpu.vector_store %arg2[%c0_4, %c0_5, %c0_6], %7 {strides = array<i32>} : memref<4x16x128xf32, #tpu.memory_space<vmem>>, vector<4x16x128xf32>,
    return
  }
  func.func @transform_0(%arg0: i32) -> (i32, i32, i32) {
    %c0_i32 = arith.constant 0 : i32
    %c0_i32_0 = arith.constant 0 : i32
    %c0_i32_1 = arith.constant 0 : i32
    return %c0_i32, %c0_i32_0, %arg0 : i32, i32, i32
  }
  func.func @transform_1(%arg0: i32) -> (i32, i32, i32) {
    %c0_i32 = arith.constant 0 : i32
    %c0_i32_0 = arith.constant 0 : i32
    %c0_i32_1 = arith.constant 0 : i32
    return %c0_i32, %c0_i32_0, %arg0 : i32, i32, i32
  }
}

</mosaic_0001>

<bundles_post_ra>
// kernel: tpu_custom_call.1
= control target key start
LH: loop header
LB: loop body
LE: loop exit
PB: predicated region body
PF: predicated region fallthrough
CT: control target
= control target key end

     0   :  { %6 = vsyncpa [#allocation3], 0  ;;  %s664_s0 = inlined_call_operand.hbm [shape: f32[4,16,256], index: 0, kind: input, shape index: {}]   ;;  %s665_s1 = inlined_call_operand.hbm [shape: f32[4,16,256], index: 1, kind: output, shape index: {}]  }
   0x1   :  { %8 = vsyncpa [#allocation3 + $0x1], 0 }
   0x2   :  { %9 = vsyncpa [#allocation4], 0 }
   0x3   :  { %11 = vsyncpa [#allocation4 + $0x1], 0  ;;  %s496_s6 = smov 0   ;;  %s498_s7 = smov 0  }
   0x4   :  { %s500_s8 = smov 0   ;;  %s502_s9 = smov 0  }
   0x5 LB: > { %s517_s10 = sadd.s32 4294967295, %s476_s9   ;;  %s284_s11 = sadd.s32 4294967294, %s476_s9   ;;  %s476_s9 = sphi %s502_s9, %s679_s9   ;;  %s472_s8 = sphi %s500_s8, %s678_s8   ;;  %s468_s7 = sphi %s498_s7, %s677_s7   ;;  %s464_s6 = sphi %s496_s6, %s676_s6  }
   0x6   : > { %s521_s12 = sadd.s32 1, %s476_s9   ;;  %s24_s13 = sadd.s32 1, %s472_s8 }
   0x7   : > { %s21_s14 = ssub.s32 %s476_s9, %s521_s12  ;;  %p31_p0 = scmp.ne.s32.totalorder %s472_s8, %s468_s7 }
   0x8   : > { %p22_p1 = scmp.eq.s32.totalorder %s21_s14, 0  ;;  %p32_p2 = scmp.eq.s32.totalorder %s476_s9, 0 }
   0x9   : > { %p37_p3 = scmp.ne.s32.totalorder %s468_s7, %s464_s6  ;;  %p38_p4 = scmp.eq.s32.totalorder %s517_s10, 0 }
   0xa   : > { %s533_s15 = scalar_select %p22_p1, %s472_s8, %s24_s13  }
   0xb   : > { %p535_p5 = por %p32_p2, %p31_p0  ;;  %p539_p6 = por %p38_p4, %p37_p3 }
   0xc   : > { %p61_p7 = scmp.eq.s32.totalorder %s517_s10, 1  ;;  %p67_p8 = scmp.eq.s32.totalorder %s284_s11, 1 }
   0xd   : > { %p308_p10 = scmp.lt.s32.totalorder %s476_s9, 2  ;;  %s87_s20 = sand.u32 1, %s472_s8  }
   0xe   : > { %p546_p11 = por %p61_p7, %p31_p0  ;;  %p550_p12 = por %p67_p8, %p37_p3 }
   0xf   : > { %s288_s21 = sshll.u32 %s476_s9, 7  ;;  %s287_s22 = sshll.u32 %s87_s20, 6 }
  0x10   : > { %s669_s18 = scalar_select %p546_p11, 1, 0 }
  0x11   : > { %s670_s19 = scalar_select %p550_p12, 1, 0 }
  0x12   : > { %s559_s25 = scalar_lea.hbm %s664_s0, %s288_s21  ;;  %s91_s26 = scalar_lea.vmem [#allocation2], %s287_s22 }
  0x13   : > { %s97_s27 = sshll.u32 %s91_s26, 4  ;;  %p563_p13 = pnand %p308_p10, %p535_p5  ;;  %s567_s27 = int_to_ptr.vmem [resolvable:$true] %s97_s27 }
  0x14   : > { %s570_s29 = scalar_lea.sflag [#allocation3], %s87_s20  ;;  %s380_s30 = scalar_lea.hbm %s559_s25, 1024 }
  0x15   : > { %p381_p1 = scmp.ne.s32.totalorder %s559_s25, %s380_s30  ;;  %p382_p2 = pneg %p563_p13 }
  0x16   : > { %s385_s4 = scalar_lea.hbm %s664_s0, 2048  ;;  %p386_p5 = scmp.lt.u32.totalorder %s559_s25, %s664_s0 }
  0x17   : > { %p383_p3 = pnand %p382_p2, %p381_p1  ;;  %p387_p7 = scmp.lt.u32.totalorder %s385_s4, %s380_s30 }
  0x18   : > { %p389_p10 = scmp.lt.u32.totalorder %s380_s30, %s559_s25 }
  0x19   : > { %p384_p4 = pneg %p383_p3  ;;  %p388_p8 = por %p387_p7, %p386_p5 }
  0x1b   : > { %p390_p9 = por %p389_p10, %p388_p8 }
  0x1d   : > { %p391_p0 = pnand %p390_p9, %p384_p4 }
  0x1f   : > { %394 = shalt.err (!%p391_p0)
}
  0x20   : > { %s395_s13 = scalar_lea.vmem %s567_s27, 1024  ;;  %s478_s14 = smov [#allocation2]  }
  0x21   : > { %p396_p1 = scmp.ne.s32.totalorder %s567_s27, %s395_s13  ;;  %s400_s16 = sshll.u32 %s478_s14, 4  ;;  %s401_s16 = int_to_ptr.vmem [resolvable:$false] %s400_s16 }
  0x22   : > { %s402_s20 = scalar_lea.vmem %s401_s16, 2048  ;;  %p403_p11 = scmp.lt.s32.totalorder %s567_s27, %s401_s16 }
  0x23   : > { %p398_p3 = pnand %p396_p1, %p382_p2  ;;  %p404_p5 = scmp.lt.s32.totalorder %s402_s20, %s395_s13 }
  0x25   : > { %p399_p12 = pneg %p398_p3  ;;  %p405_p7 = por %p404_p5, %p403_p11 }
  0x27   : > { %p406_p8 = pnand %p405_p7, %p399_p12 }
  0x29   : > { %409 = shalt.err (!%p406_p8)
}
  0x2a   : > { %s479_s21 = smov 256   ;;  %s480_s22 = smov 128  }
  0x2b   : > { %s481_s23 = smov 8   ;;  %p105_p9 = scmp.lt.s32.totalorder %s476_s9, 3 }
  0x2c   : > { %303 = dma.hbm_to_vmem [thread:$0]  (!%p563_p13), %s559_s25, 1024, %s567_s27, %s570_s29, %s479_s21, %s480_s22, %s481_s23  }
  0x2d   : > { %p672_p0 = scmp.ge.s32.totalorder %s476_s9, 1 }
  0x2f   : > { %p106_p2 = pnand %p672_p0, %p105_p9 }
  0x30   : > { %s602_s24 = sand.u32 (!%p106_p2), 1, %s468_s7  }
  0x31   : > { %109 = sbr.rel (%p106_p2) target bundleno = 109 (0x6d), region = 24  ;;  %s290_s26 = sshll.u32 (!%p106_p2), %s602_s24, 6 }
  0x32   : > { %s112_s30 = scalar_lea.sflag (!%p106_p2), [#allocation3], %s602_s24  ;;  %s115_s2 = scalar_lea.vmem (!%p106_p2), [#allocation2], %s290_s26 }
  0x38   : > { %455 = dma.done.wait (%p539_p6), %s112_s30, 1024  }
  0x39   : > { %457 = vsyncadd (%p539_p6), %s112_s30, 4294966272  ;;  %v134_v0 = vld [vmem:[%s115_s2] sm:$0xff]  ;;  %v135_v1 = vld [vmem:[%s115_s2 + $0x8] sm:$0xff]  ;;  %s133_s17 = scalar_lea.vmem [#allocation5], %s290_s26  ;;  %s293_s27 = sshll.u32 %s517_s10, 7 }
  0x3a   : > { %v136_v2 = vld [vmem:[%s115_s2 + $0x10] sm:$0xff]  ;;  %v142_v3 = vsub.f32 0.0, %v134_v0  ;;  %v143_v4 = vsub.f32 0.0, %v135_v1  ;;  %v137_v6 = vld [vmem:[%s115_s2 + $0x18] sm:$0xff]  ;;  %v138_v7 = vld [vmem:[%s115_s2 + $0x20] sm:$0xff]  ;;  %s211_s25 = sshll.u32 %s133_s17, 4  ;;  %s620_s3 = scalar_lea.hbm %s665_s1, %s293_s27  ;;  %s615_s25 = int_to_ptr.vmem [resolvable:$true] %s211_s25 }
  0x3b   : > { %v144_v5 = vsub.f32 0.0, %v136_v2  ;;  %v139_v8 = vld [vmem:[%s115_s2 + $0x28] sm:$0xff]  ;;  %v145_v9 = vsub.f32 0.0, %v137_v6  ;;  %v146_v10 = vsub.f32 0.0, %v138_v7  ;;  %v140_v12 = vld [vmem:[%s115_s2 + $0x30] sm:$0xff]  ;;  %v141_v13 = vld [vmem:[%s115_s2 + $0x38] sm:$0xff] }
  0x3c   : > { %v147_v11 = vsub.f32 0.0, %v139_v8  ;;  %v150_v14 = vmul.f32 1.442695, %v142_v3  ;;  %v152_v15 = vmul.f32 1.442695, %v143_v4  ;;  %v148_v19 = vsub.f32 0.0, %v140_v12 }
  0x3d   : > { %v154_v16 = vmul.f32 1.442695, %v144_v5  ;;  %v156_v17 = vmul.f32 1.442695, %v145_v9  ;;  %v158_v18 = vmul.f32 1.442695, %v146_v10 }
  0x3e   : > { %348 = vpow2.f32 %v150_v14  ;;  %v149_v20 = vsub.f32 0.0, %v141_v13  ;;  %v160_v21 = vmul.f32 1.442695, %v147_v11  ;;  %v162_v22 = vmul.f32 1.442695, %v148_v19  ;;  %s199_s10 = scalar_lea.sflag [#allocation4], %s602_s24 }
  0x3f   : > { %350 = vpow2.f32 %v152_v15  ;;  %s410_s4 = scalar_lea.vmem %s615_s25, 1024  ;;  %p673_p11 = scmp.ne.s32.totalorder %s669_s18, 0 }
  0x40   : > { %352 = vpow2.f32 %v154_v16  ;;  %v164_v23 = vmul.f32 1.442695, %v149_v20  ;;  %p411_p6 = scmp.ne.s32.totalorder %s615_s25, %s410_s4  ;;  %s482_s5 = smov [#allocation5]  }
  0x41   : > { %354 = vpow2.f32 %v156_v17  ;;  %s414_s11 = sshll.u32 %s482_s5, 4  ;;  %s415_s11 = int_to_ptr.vmem [resolvable:$false] %s414_s11 }
  0x42   : > { %356 = vpow2.f32 %v158_v18  ;;  %p412_p12 = pnand %p411_p6, %p673_p11  ;;  %s416_s13 = scalar_lea.vmem %s415_s11, 2048 }
  0x43   : > { %358 = vpow2.f32 %v160_v21  ;;  %p417_p4 = scmp.lt.s32.totalorder %s615_s25, %s415_s11  ;;  %p418_p10 = scmp.lt.s32.totalorder %s416_s13, %s410_s4 }
  0x44   : > { %360 = vpow2.f32 %v162_v22  ;;  %p413_p13 = pneg %p412_p12 }
  0x45   : > { %362 = vpow2.f32 %v164_v23  ;;  %p419_p1 = por %p418_p10, %p417_p4 }
  0x47   : > { %p420_p3 = pnand %p419_p1, %p413_p13 }
  0x48   : > { %v349_v24 = vpop.eup %348 }
  0x49   : > { %v351_v25 = vpop.eup %350  ;;  %v166_v26 = vadd.f32 1.0, %v349_v24 }
  0x4a   : > { %v353_v27 = vpop.eup %352  ;;  %v167_v28 = vadd.f32 1.0, %v351_v25 }
  0x4b   : > { %v355_v29 = vpop.eup %354  ;;  %364 = vrcp.f32 %v166_v26  ;;  %v168_v30 = vadd.f32 1.0, %v353_v27 }
  0x4c   : > { %v357_v31 = vpop.eup %356  ;;  %366 = vrcp.f32 %v167_v28  ;;  %v169_v32 = vadd.f32 1.0, %v355_v29 }
  0x4d   : > { %v359_v33 = vpop.eup %358  ;;  %368 = vrcp.f32 %v168_v30  ;;  %v170_v34 = vadd.f32 1.0, %v357_v31 }
  0x4e   : > { %v361_v35 = vpop.eup %360  ;;  %370 = vrcp.f32 %v169_v32  ;;  %v171_v36 = vadd.f32 1.0, %v359_v33 }
  0x4f   : > { %v363_v37 = vpop.eup %362  ;;  %372 = vrcp.f32 %v170_v34  ;;  %v172_v38 = vadd.f32 1.0, %v361_v35 }
  0x50   : > { %374 = vrcp.f32 %v171_v36  ;;  %v173_v39 = vadd.f32 1.0, %v363_v37 }
  0x51   : > { %376 = vrcp.f32 %v172_v38 }
  0x52   : > { %378 = vrcp.f32 %v173_v39 }
  0x55   : > { %v365_v40 = vpop.eup %364 }
  0x56   : > { %v367_v41 = vpop.eup %366  ;;  %190 = vst [vmem:[%s133_s17] sm:$0xff] %v365_v40 }
  0x57   : > { %v369_v42 = vpop.eup %368  ;;  %191 = vst [vmem:[%s133_s17 + $0x8] sm:$0xff] %v367_v41 }
  0x58   : > { %v371_v43 = vpop.eup %370  ;;  %192 = vst [vmem:[%s133_s17 + $0x10] sm:$0xff] %v369_v42 }
  0x59   : > { %v373_v44 = vpop.eup %372  ;;  %193 = vst [vmem:[%s133_s17 + $0x18] sm:$0xff] %v371_v43 }
  0x5a   : > { %v375_v45 = vpop.eup %374  ;;  %194 = vst [vmem:[%s133_s17 + $0x20] sm:$0xff] %v373_v44 }
  0x5b   : > { %v377_v46 = vpop.eup %376  ;;  %195 = vst [vmem:[%s133_s17 + $0x28] sm:$0xff] %v375_v45 }
  0x5c   : > { %v379_v47 = vpop.eup %378  ;;  %196 = vst [vmem:[%s133_s17 + $0x30] sm:$0xff] %v377_v46 }
  0x5d   : > { %197 = vst [vmem:[%s133_s17 + $0x38] sm:$0xff] %v379_v47 }
  0x5e   : > { %423 = shalt.err (!%p420_p3)
}
  0x5f   : > { %s424_s14 = scalar_lea.hbm %s620_s3, 1024  ;;  %s428_s21 = scalar_lea.hbm %s665_s1, 2048 }
  0x60   : > { %p425_p5 = scmp.ne.s32.totalorder %s620_s3, %s424_s14  ;;  %p429_p9 = scmp.lt.u32.totalorder %s620_s3, %s665_s1 }
  0x61   : > { %p430_p0 = scmp.lt.u32.totalorder %s428_s21, %s424_s14  ;;  %p432_p6 = scmp.lt.u32.totalorder %s424_s14, %s620_s3 }
  0x62   : > { %p426_p7 = pnand %p425_p5, %p673_p11 }
  0x63   : > { %p431_p2 = por %p430_p0, %p429_p9 }
  0x64   : > { %p427_p8 = pneg %p426_p7 }
  0x65   : > { %p433_p12 = por %p432_p6, %p431_p2 }
  0x67   : > { %p434_p13 = pnand %p433_p12, %p427_p8 }
  0x69   : > { %437 = shalt.err (!%p434_p13)
}
  0x6a   : > { %s483_s26 = smov 128   ;;  %s484_s30 = smov 256  }
  0x6b   : > { %s485_s2 = smov 8  }
  0x6c   : > { %298 = dma.vmem_to_hbm [thread:$0]  (%p673_p11), %s615_s25, 1024, %s620_s3, %s199_s10, %s483_s26, %s484_s30, %s485_s2  }
  0x6d PF: > { %s226_s17 = sand.u32 1, %s464_s6   ;;  %p674_p4 = scmp.ne.s32.totalorder %s670_s19, 0 }
  0x6e   : > { %p675_p10 = scmp.ge.s32.totalorder %s476_s9, 2  ;;  %s227_s27 = scalar_lea.sflag [#allocation4], %s226_s17 }
  0x70   : > { %p305_p1 = pnand %p675_p10, %p674_p4 }
  0x72   : > { %459 = dma.done.wait (!%p305_p1), %s227_s27, 1024  }
  0x73   : > { %461 = vsyncadd (!%p305_p1), %s227_s27, 4294966272  ;;  %p14_p3 = scmp.ge.s32.totalorder %s521_s12, 4   ;;  %s676_s6 = smov %s468_s7 }
  0x74   : > { %s677_s7 = smov %s472_s8  ;;  %s678_s8 = smov %s533_s15 }
  0x75   : > { %s679_s9 = smov %s521_s12  ;;  %16 = sbr.rel (!%p14_p3) target bundleno = 5 (0x5), region = 69 }
  0x7c   :  { %232 = vsyncpa [#allocation3], 1 }
  0x7d   :  { %234 = vsyncpa [#allocation3 + $0x1], 1 }
  0x7e   :  { %235 = vsyncpa [#allocation4], 1 }
  0x7f   :  { %237 = vsyncpa [#allocation4 + $0x1], 1 }

</bundles_post_ra>
